<compile_context>
chip_gen: v6e
topology: v6e:2x2x1
jax: 0.10.0
libtpu: 0.0.40
codegen_flags: <defaults>
</compile_context>

<pallas_src>
import jax
import jax.numpy as jnp
from jax.experimental import pallas as pl
from jax.experimental.pallas import tpu as pltpu


def _round_up(x: int, m: int) -> int:
    return (x + m - 1) // m * m


def _bow_kernel(x_ref, w_ref, b_ref, tgt_ref, logp_ref, nll_ref, acc_ref):
    # Grid: (batch_tile i, vocab_tile k); k is the reduction axis (innermost).
    k = pl.program_id(1)

    @pl.when(k == 0)
    def _init():
        acc_ref[...] = jnp.zeros_like(acc_ref)

    # Partial matmul on the MXU: bf16 x bf16 -> f32 accumulate.
    acc_ref[...] += jnp.dot(x_ref[...], w_ref[...],
                            preferred_element_type=jnp.float32)

    @pl.when(k == pl.num_programs(1) - 1)
    def _finalize():
        # Bias add hoisted to the finalize step (runs once per output tile).
        feats = acc_ref[...] + b_ref[...]

        # Numerically stable log_softmax over the (padded) label axis.
        m = jnp.max(feats, axis=1, keepdims=True)
        shifted = feats - m
        lse = jnp.log(jnp.sum(jnp.exp(shifted), axis=1, keepdims=True))
        log_probs = shifted - lse
        logp_ref[...] = log_probs

        # Masked NLL tile: only the target column carries -log_prob, rest 0.
        lbl_iota = jax.lax.broadcasted_iota(jnp.int32, log_probs.shape, 1)
        nll_ref[...] = jnp.where(lbl_iota == tgt_ref[...], -log_probs, 0.0)


def bow_classifier_forward(bow_vec, weight, bias, target, *,
                           bt_max: int = 256, vt_max: int = 2048):
    """BoWClassifier.forward.

    bow_vec: [B, V] float            (bag-of-words counts)
    weight : [L, V] float            (PyTorch nn.Linear layout: [out, in])
    bias   : [L] or [1, L] float
    target : [B] int                 (class indices in [0, L))
    Returns {"loss": scalar f32, "log_probs": [B, L] f32}.
    """
    B, V = bow_vec.shape
    L = weight.shape[0]

    # Tile sizes (sized to keep double-buffered bf16 tiles well under v7x VMEM).
    Bt = min(bt_max, _round_up(B, 8))
    Bpad = _round_up(B, Bt)
    Vt = min(vt_max, _round_up(V, 128))
    Vpad = _round_up(V, Vt)
    Lpad = _round_up(max(L, 128), 128)
    nb, nk = Bpad // Bt, Vpad // Vt

    # Pad + cast operands. bf16 inputs (counts are small integers, exactly
    # representable), f32 accumulation inside the kernel.
    x = jnp.zeros((Bpad, Vpad), jnp.bfloat16).at[:B, :V].set(
        bow_vec.astype(jnp.bfloat16))
    w = jnp.zeros((Vpad, Lpad), jnp.bfloat16).at[:V, :L].set(
        weight.T.astype(jnp.bfloat16))
    # Padded label columns get a huge negative bias so they never win the softmax.
    b = jnp.full((1, Lpad), -1e30, jnp.float32).at[0, :L].set(
        bias.reshape(-1).astype(jnp.float32))
    tgt = jnp.zeros((Bpad, 1), jnp.int32).at[:B, 0].set(target.astype(jnp.int32))

    grid_spec = pltpu.PrefetchScalarGridSpec(
        num_scalar_prefetch=0,
        grid=(nb, nk),
        in_specs=[
            pl.BlockSpec((Bt, Vt), lambda i, k: (i, k)),      # bow_vec tile
            pl.BlockSpec((Vt, Lpad), lambda i, k: (k, 0)),    # weight tile
            pl.BlockSpec((1, Lpad), lambda i, k: (0, 0)),     # bias (whole)
            pl.BlockSpec((Bt, 1), lambda i, k: (i, 0)),       # targets
        ],
        out_specs=[
            pl.BlockSpec((Bt, Lpad), lambda i, k: (i, 0)),    # log_probs (padded)
            pl.BlockSpec((Bt, Lpad), lambda i, k: (i, 0)),    # masked NLL (padded)
        ],
        scratch_shapes=[pltpu.VMEM((Bt, Lpad), jnp.float32)],
    )

    logp_pad, nll_pad = pl.pallas_call(
        _bow_kernel,
        out_shape=(
            jax.ShapeDtypeStruct((Bpad, Lpad), jnp.float32),
            jax.ShapeDtypeStruct((Bpad, Lpad), jnp.float32),
        ),
        grid_spec=grid_spec,
        compiler_params=pltpu.CompilerParams(
            dimension_semantics=("parallel", "arbitrary")),
        cost_estimate=pl.CostEstimate(
            flops=2 * Bpad * Vpad * Lpad,
            bytes_accessed=(2 * (Bpad * Vpad + Vpad * Lpad)
                            + 4 * (Lpad + Bpad + 2 * Bpad * Lpad)),
            transcendentals=Bpad * Lpad,
        ),
    )(x, w, b, tgt)

    log_probs = logp_pad[:B, :L]
    # Final tiny O(B) mean over the per-example NLL produced by the kernel.
    loss = jnp.sum(nll_pad[:B]) / jnp.float32(B)
    return {"loss": loss, "log_probs": log_probs}


if __name__ == "__main__":
    # Small deterministic problem sized to exercise both grid axes:
    # batch=16 with Bt=8 (2 parallel batch tiles), vocab=512 with Vt=128
    # (4 reduction tiles), num_labels=8 (padded to 128 lanes in-kernel).
    B, V, L = 16, 512, 8
    key = jax.random.PRNGKey(0)
    k_x, k_w, k_b, k_t = jax.random.split(key, 4)

    # Synthetic bag-of-words counts.
    bow_vec = jax.random.randint(k_x, (B, V), 0, 3).astype(jnp.float32)

    # Deterministic parameter init mimicking nn.Linear's U(-1/sqrt(V), 1/sqrt(V)).
    bound = 1.0 / jnp.sqrt(jnp.float32(V))
    weight = jax.random.uniform(k_w, (L, V), jnp.float32, -bound, bound)  # [out, in]
    bias = jax.random.uniform(k_b, (L,), jnp.float32, -bound, bound)
    target = jax.random.randint(k_t, (B,), 0, L, dtype=jnp.int32)

    out = bow_classifier_forward(bow_vec, weight, bias, target,
                                 bt_max=8, vt_max=128)
    jax.block_until_ready(out["loss"])
    jax.block_until_ready(out["log_probs"])

    # Pure-JAX reference built from the same bf16-rounded operands the kernel uses
    # (f32 accumulation), so the comparison isolates kernel correctness.
    xb = bow_vec.astype(jnp.bfloat16).astype(jnp.float32)
    wb = weight.T.astype(jnp.bfloat16).astype(jnp.float32)
    feats_ref = xb @ wb + bias.reshape(1, -1)
    lp_ref = jax.nn.log_softmax(feats_ref, axis=1)
    loss_ref = -jnp.mean(lp_ref[jnp.arange(B), target])

    assert out["log_probs"].shape == (B, L)
    assert jnp.allclose(out["log_probs"], lp_ref, atol=1e-3), "log_probs mismatch"
    assert jnp.allclose(out["loss"], loss_ref, atol=1e-3), "loss mismatch"

    print("KERNEL_OK")
</pallas_src>

<mosaic_0001>
module attributes {stable_mosaic.version = 11 : i64} {
  func.func @_bow_kernel(%arg0: i32, %arg1: i32, %arg2: memref<8x128xbf16, #tpu.memory_space<vmem>>, %arg3: memref<128x128xbf16, #tpu.memory_space<vmem>>, %arg4: memref<1x128xf32, #tpu.memory_space<vmem>>, %arg5: memref<8x1xi32, #tpu.memory_space<vmem>>, %arg6: memref<8x128xf32, #tpu.memory_space<vmem>>, %arg7: memref<8x128xf32, #tpu.memory_space<vmem>>, %arg8: memref<8x128xf32, #tpu.memory_space<vmem>>) attributes {dimension_semantics = [#tpu.dimension_semantics<parallel>, #tpu.dimension_semantics<arbitrary>], iteration_bounds = array<i64: 2, 4>, scalar_prefetch = 0 : i64, scratch_operands = 1 : i64, tpu.core_type = #tpu.core_type<tc>, window_params = [{transform_indices = @transform_0, window_bounds = array<i64: 8, 128>}, {transform_indices = @transform_1, window_bounds = array<i64: 128, 128>}, {pipeline_mode = #tpu.pipeline_mode<synchronous>, transform_indices = @transform_2, window_bounds = array<i64: 1, 128>}, {transform_indices = @transform_3, window_bounds = array<i64: 8, 1>}, {transform_indices = @transform_4, window_bounds = array<i64: 8, 128>}, {transform_indices = @transform_5, window_bounds = array<i64: 8, 128>}]} {
    %c0_i32 = arith.constant 0 : i32
    %0 = arith.cmpi eq, %arg1, %c0_i32 : i32
    %1 = arith.extui %0 : i1 to i32
    %c0_i32_0 = arith.constant 0 : i32
    %2 = arith.cmpi ne, %1, %c0_i32_0 : i32
    scf.if %2 {
      %cst_9 = arith.constant 0.000000e+00 : f32
      %12 = vector.broadcast %cst_9 : f32 to vector<8x128xf32>
      %c0_10 = arith.constant 0 : index
      %c0_11 = arith.constant 0 : index
      %13 = vector.load %arg8[%c0_10, %c0_11] : memref<8x128xf32, #tpu.memory_space<vmem>>, vector<8x128xf32>
      tpu.vector_store %arg8[%c0_10, %c0_11], %12 {strides = array<i32>} : memref<8x128xf32, #tpu.memory_space<vmem>>, vector<8x128xf32>,
    } else {
    }
    %c0 = arith.constant 0 : index
    %c0_1 = arith.constant 0 : index
    %3 = vector.load %arg8[%c0, %c0_1] : memref<8x128xf32, #tpu.memory_space<vmem>>, vector<8x128xf32>
    %c0_2 = arith.constant 0 : index
    %c0_3 = arith.constant 0 : index
    %4 = vector.load %arg2[%c0_2, %c0_3] : memref<8x128xbf16, #tpu.memory_space<vmem>>, vector<8x128xbf16>
    %c0_4 = arith.constant 0 : index
    %c0_5 = arith.constant 0 : index
    %5 = vector.load %arg3[%c0_4, %c0_5] : memref<128x128xbf16, #tpu.memory_space<vmem>>, vector<128x128xbf16>
    %cst = arith.constant dense<0.000000e+00> : vector<8x128xf32>
    %6 = tpu.matmul %4, %5, %cst {dimension_numbers = #tpu.dot_dimension_numbers<[1], [0], [0], [1], [0, 0, 1, 1], [], []>} : vector<8x128xbf16>, vector<128x128xbf16>, vector<8x128xf32> -> vector<8x128xf32>
    %7 = arith.addf %3, %6 : vector<8x128xf32>
    %c0_6 = arith.constant 0 : index
    %c0_7 = arith.constant 0 : index
    %8 = vector.load %arg8[%c0_6, %c0_7] : memref<8x128xf32, #tpu.memory_space<vmem>>, vector<8x128xf32>
    tpu.vector_store %arg8[%c0_6, %c0_7], %7 {strides = array<i32>} : memref<8x128xf32, #tpu.memory_space<vmem>>, vector<8x128xf32>,
    %c3_i32 = arith.constant 3 : i32
    %9 = arith.cmpi eq, %arg1, %c3_i32 : i32
    %10 = arith.extui %9 : i1 to i32
    %c0_i32_8 = arith.constant 0 : i32
    %11 = arith.cmpi ne, %10, %c0_i32_8 : i32
    scf.if %11 {
      %c0_9 = arith.constant 0 : index
      %c0_10 = arith.constant 0 : index
      %12 = vector.load %arg8[%c0_9, %c0_10] : memref<8x128xf32, #tpu.memory_space<vmem>>, vector<8x128xf32>
      %c0_11 = arith.constant 0 : index
      %c0_12 = arith.constant 0 : index
      %13 = vector.load %arg4[%c0_11, %c0_12] : memref<1x128xf32, #tpu.memory_space<vmem>>, vector<1x128xf32>
      %14 = vector.broadcast %13 : vector<1x128xf32> to vector<8x128xf32>
      %15 = arith.addf %12, %14 : vector<8x128xf32>
      %cst_13 = arith.constant dense<0xFF800000> : vector<8xf32>
      %16 = vector.multi_reduction <maximumf>, %15, %cst_13 [1] : vector<8x128xf32> to vector<8xf32>
      %17 = vector.shape_cast %16 : vector<8xf32> to vector<8x1xf32>
      %18 = vector.broadcast %17 : vector<8x1xf32> to vector<8x128xf32>
      %19 = arith.subf %15, %18 : vector<8x128xf32>
      %20 = math.exp %19 : vector<8x128xf32>
      %cst_14 = arith.constant dense<0.000000e+00> : vector<8xf32>
      %21 = vector.multi_reduction <add>, %20, %cst_14 [1] : vector<8x128xf32> to vector<8xf32>
      %22 = vector.shape_cast %21 : vector<8xf32> to vector<8x1xf32>
      %23 = math.log %22 : vector<8x1xf32>
      %24 = vector.broadcast %23 : vector<8x1xf32> to vector<8x128xf32>
      %25 = arith.subf %19, %24 : vector<8x128xf32>
      %c0_15 = arith.constant 0 : index
      %c0_16 = arith.constant 0 : index
      %26 = vector.load %arg6[%c0_15, %c0_16] : memref<8x128xf32, #tpu.memory_space<vmem>>, vector<8x128xf32>
      tpu.vector_store %arg6[%c0_15, %c0_16], %25 {strides = array<i32>} : memref<8x128xf32, #tpu.memory_space<vmem>>, vector<8x128xf32>,
      %27 = tpu.iota {dimensions = array<i32: 1>} : vector<8x128xi32>
      %c0_17 = arith.constant 0 : index
      %c0_18 = arith.constant 0 : index
      %28 = vector.load %arg5[%c0_17, %c0_18] : memref<8x1xi32, #tpu.memory_space<vmem>>, vector<8x1xi32>
      %29 = vector.broadcast %28 : vector<8x1xi32> to vector<8x128xi32>
      %30 = arith.cmpi eq, %27, %29 : vector<8x128xi32>
      %cst_19 = arith.constant 0.000000e+00 : f32
      %31 = vector.broadcast %cst_19 : f32 to vector<8x128xf32>
      %32 = arith.subf %31, %25 : vector<8x128xf32>
      %cst_20 = arith.constant 0.000000e+00 : f32
      %33 = vector.broadcast %cst_20 : f32 to vector<8x128xf32>
      %34 = arith.select %30, %32, %33 : vector<8x128xi1>, vector<8x128xf32>
      %c0_21 = arith.constant 0 : index
      %c0_22 = arith.constant 0 : index
      %35 = vector.load %arg7[%c0_21, %c0_22] : memref<8x128xf32, #tpu.memory_space<vmem>>, vector<8x128xf32>
      tpu.vector_store %arg7[%c0_21, %c0_22], %34 {strides = array<i32>} : memref<8x128xf32, #tpu.memory_space<vmem>>, vector<8x128xf32>,
    } else {
    }
    return
  }
  func.func @transform_0(%arg0: i32, %arg1: i32) -> (i32, i32) {
    %c0_i32 = arith.constant 0 : i32
    return %arg0, %arg1 : i32, i32
  }
  func.func @transform_1(%arg0: i32, %arg1: i32) -> (i32, i32) {
    %c0_i32 = arith.constant 0 : i32
    %c0_i32_0 = arith.constant 0 : i32
    return %arg1, %c0_i32 : i32, i32
  }
  func.func @transform_2(%arg0: i32, %arg1: i32) -> (i32, i32) {
    %c0_i32 = arith.constant 0 : i32
    %c0_i32_0 = arith.constant 0 : i32
    %c0_i32_1 = arith.constant 0 : i32
    return %c0_i32, %c0_i32_0 : i32, i32
  }
  func.func @transform_3(%arg0: i32, %arg1: i32) -> (i32, i32) {
    %c0_i32 = arith.constant 0 : i32
    %c0_i32_0 = arith.constant 0 : i32
    return %arg0, %c0_i32 : i32, i32
  }
  func.func @transform_4(%arg0: i32, %arg1: i32) -> (i32, i32) {
    %c0_i32 = arith.constant 0 : i32
    %c0_i32_0 = arith.constant 0 : i32
    return %arg0, %c0_i32 : i32, i32
  }
  func.func @transform_5(%arg0: i32, %arg1: i32) -> (i32, i32) {
    %c0_i32 = arith.constant 0 : i32
    %c0_i32_0 = arith.constant 0 : i32
    return %arg0, %c0_i32 : i32, i32
  }
}

</mosaic_0001>

<bundles_post_ra>
// kernel: tpu_custom_call.1
= control target key start
LH: loop header
LB: loop body
LE: loop exit
PB: predicated region body
PF: predicated region fallthrough
CT: control target
= control target key end

     0   :  { %s1480_s0 = inlined_call_operand.hbm [shape: bf16[16,512], index: 0, kind: input, shape index: {}]   ;;  %s1481_s1 = inlined_call_operand.hbm [shape: bf16[512,128], index: 1, kind: input, shape index: {}]   ;;  %s1482_s2 = inlined_call_operand.vmem [shape: f32[1,128], index: 2, kind: input, shape index: {}]   ;;  %s1483_s3 = inlined_call_operand.vmem [shape: s32[16,1], index: 3, kind: input, shape index: {}]   ;;  %s1484_s4 = inlined_call_operand.hbm [shape: f32[16,128], index: 4, kind: output, shape index: {0}]   ;;  %s1485_s5 = inlined_call_operand.hbm [shape: f32[16,128], index: 5, kind: output, shape index: {1}]  }
   0x1   :  { %1496 = sst [smem:[#allocation23_spill]] %s1480_s0 }
   0x2   :  { %1497 = sst [smem:[#allocation24_spill]] %s1484_s4 }
   0x3   :  { %1498 = sst [smem:[#allocation25_spill]] %s1485_s5 }
   0x4   :  { %11 = vsyncpa [#allocation4], 0 }
   0x5   :  { %13 = vsyncpa [#allocation4 + $0x1], 0 }
   0x6   :  { %14 = vsyncpa [#allocation7], 0 }
   0x7   :  { %16 = vsyncpa [#allocation7 + $0x1], 0 }
   0x8   :  { %17 = vsyncpa [#allocation5], 0 }
   0x9   :  { %19 = vsyncpa [#allocation5 + $0x1], 0 }
   0xa   :  { %20 = vsyncpa [#allocation10], 0 }
   0xb   :  { %22 = vsyncpa [#allocation10 + $0x1], 0  ;;  %s1150_s18 = smov 0   ;;  %s1152_s19 = smov 0  }
   0xc   :  { %s1154_s20 = smov 0   ;;  %s1156_s21 = smov 0  }
   0xd   :  { %s1158_s22 = smov 0   ;;  %s1160_s23 = smov 0  }
   0xe   :  { %s1162_s24 = smov 0   ;;  %s1164_s25 = smov 0  }
   0xf   :  { %s1166_s26 = smov 0   ;;  %s1168_s27 = smov 0  }
  0x10   :  { %s1170_s28 = smov 0   ;;  %s1172_s29 = smov 0  }
  0x11   :  { %s1174_s30 = smov 0   ;;  %s1176_s6 = smov 0  }
  0x12 LB: > { %1499 = sst [smem:[#allocation15_spill]] %s1056_s18  ;;  %s1486_s7 = sadd.s32 4294967295, %s1108_s6   ;;  %s1108_s6 = sphi %s1176_s6, %s28_s6   ;;  %s1104_s30 = sphi %s1174_s30, %s1544_s30   ;;  %s1100_s29 = sphi %s1172_s29, %s1543_s29   ;;  %s1096_s28 = sphi %s1170_s28, %s1542_s28   ;;  %s1092_s27 = sphi %s1168_s27, %s1541_s27   ;;  %s1088_s26 = sphi %s1166_s26, %s1531_s26   ;;  %s1084_s25 = sphi %s1164_s25, %s1540_s25   ;;  %s1080_s24 = sphi %s1162_s24, %s1539_s24   ;;  %s1076_s23 = sphi %s1160_s23, %s1538_s23   ;;  %s1072_s22 = sphi %s1158_s22, %s1537_s22   ;;  %s1068_s21 = sphi %s1156_s21, %s1536_s21   ;;  %s1064_s20 = sphi %s1154_s20, %s1528_s20   ;;  %s1060_s19 = sphi %s1152_s19, %s1535_s19   ;;  %s1056_s18 = sphi %s1150_s18, %s1534_s18  }
  0x13   : > { %1500 = sst [smem:[#allocation16_spill]] %s1064_s20  ;;  %s37_s9 = sadd.s32 1, %s1100_s29 }
  0x14   : > { %1501 = sst [smem:[#allocation17_spill]] %s1088_s26  ;;  %s40_s10 = sadd.s32 1, %s1104_s30 }
  0x15   : > { %p38_p0 = scmp.ge.s32.totalorder %s37_s9, 4  ;;  %s49_s11 = sadd.s32 1, %s1088_s26 }
  0x16   : > { %p56_p1 = scmp.ne.s32.totalorder %s1088_s26, %s1084_s25  ;;  %p57_p2 = scmp.eq.s32.totalorder %s1108_s6, 0 }
  0x17   : > { %s1546_s9 = smov (%p38_p0, %s37_s9), 0  ;;  %s1548_s10 = smov (!%p38_p0, %s40_s10), %s1104_s30 }
  0x18   : > { %1502 = sst [smem:[#allocation18_spill]] %s1546_s9  ;;  %s45_s12 = ssub.s32 %s1100_s29, %s1546_s9 }
  0x19   : > { %p1233_p3 = por %p57_p2, %p56_p1  ;;  %p42_p4 = scmp.ge.s32.totalorder %s1548_s10, 2 }
  0x1a   : > { %p62_p5 = scmp.ne.s32.totalorder %s1084_s25, %s1080_s24  ;;  %p1240_p6 = scmp.eq.s32.totalorder %s1486_s7, 0 }
  0x1b   : > { %p73_p7 = scmp.eq.s32.totalorder %s45_s12, 0  ;;  %s1550_s10 = smov (%p42_p4, %s1548_s10), 0 }
  0x1c   : > { %1505 = sst [smem:[#allocation19_spill]] %s1550_s10  ;;  %p1248_p8 = por %p1240_p6, %p62_p5 }
  0x1d   : > { %s75_s16 = sadd.s32 1, %s1076_s23  ;;  %s44_s17 = ssub.s32 %s1104_s30, %s1550_s10 }
  0x1e   : > { %p82_p9 = scmp.ne.s32.totalorder %s1076_s23, %s1072_s22  ;;  %s46_s24 = sor.u32 %s45_s12, %s44_s17 }
  0x1f   : > { %p88_p10 = scmp.ne.s32.totalorder %s1072_s22, %s1068_s21  ;;  %p47_p11 = scmp.eq.s32.totalorder %s46_s24, 0 }
  0x20   : > { %p1261_p12 = por %p82_p9, %p57_p2  ;;  %p146_p0 = scmp.eq.s32.totalorder %s44_s17, 0 }
  0x21   : > { %s1266_s7 = scalar_select %p73_p7, %s1076_s23, %s75_s16  }
  0x22   : > { %s1269_s9 = scalar_select %p47_p11, %s1088_s26, %s49_s11  }
  0x23   : > { %1508 = sst [smem:[#allocation20_spill]] %s1266_s7  ;;  %p1273_p13 = por %p88_p10, %p1240_p6 }
  0x24   : > { %1509 = sst [smem:[#allocation21_spill]] %s1269_s9  ;;  %s148_s21 = sadd.s32 1, %s1064_s20 }
  0x25   : > { %s1510_s10 = scalar_select %p1273_p13, 1, 0 }
  0x26   : > { %p158_p1 = scmp.ne.s32.totalorder %s1064_s20, %s1060_s19  ;;  %s1512_s24 = sadd.s32 4294967295, %s1108_s6  }
  0x27   : > { %s1281_s12 = scalar_select %p146_p0, %s1064_s20, %s148_s21  }
  0x28   : > { %p159_p2 = scmp.eq.s32.totalorder %s1512_s24, 7  ;;  %p164_p4 = scmp.ne.s32.totalorder %s1060_s19, %s1056_s18 }
  0x29   : > { %1511 = sst [smem:[#allocation22_spill]] %s1281_s12  ;;  %s1513_s16 = sadd.s32 4294967294, %s1108_s6  }
  0x2a   : > { %p165_p5 = scmp.eq.s32.totalorder %s1513_s16, 7  ;;  %p1289_p7 = por %p159_p2, %p158_p1 }
  0x2b   : > { %p740_p6 = scmp.lt.s32.totalorder %s1108_s6, 8  ;;  %s214_s17 = sand.u32 1, %s1088_s26  }
  0x2c   : > { %s1514_s11 = scalar_select %p1289_p7, 1, 0 }
  0x2d   : > { %p1294_p9 = por %p165_p5, %p164_p4  ;;  %s659_s21 = sshll.u32 %s214_s17, 2 }
  0x2e   : > { %s660_s9 = sshll.u32 %s1104_s30, 2  ;;  %s218_s24 = scalar_lea.vmem [#allocation3], %s659_s21 }
  0x2f   : > { %s1515_s14 = scalar_select %p1294_p9, 1, 0 }
  0x30   : > { %s223_s7 = sadd.s32 %s1100_s29, %s660_s9  ;;  %s227_s12 = sshll.u32 %s218_s24, 4  ;;  %s228_s12 = int_to_ptr.vmem [resolvable:$true] %s227_s12 }
  0x31   : > { %s661_s20 = sshll.u32 %s223_s7, 6  ;;  %s1516_s0 = sld [smem:[#allocation23_spill]] }
  0x32   : > { %p1306_p10 = pnand %p740_p6, %p1233_p3  ;;  %p1312_p11 = pnand %p740_p6, %p1261_p12 }
  0x33   : > { %p665_p0 = scmp.ge.s32.totalorder %s1108_s6, 1  ;;  %p260_p1 = scmp.lt.s32.totalorder %s1108_s6, 9 }
  0x34   : > { %s215_s9 = scalar_lea.sflag [#allocation4], %s214_s17  ;;  %p876_p2 = pneg %p1306_p10 }
  0x35   : > { %s887_s7 = scalar_lea.vmem %s228_s12, 64  ;;  %s1110_s18 = smov [#allocation3]  }
  0x36   : > { %p888_p4 = scmp.ne.s32.totalorder %s228_s12, %s887_s7 }
  0x37   : > { %s225_s5 = scalar_lea.hbm %s1516_s0, %s661_s20  ;;  %s892_s20 = sshll.u32 %s1110_s18, 4  ;;  %s893_s20 = int_to_ptr.vmem [resolvable:$false] %s892_s20 }
  0x38   : > { %p890_p5 = pnand %p888_p4, %p876_p2  ;;  %s894_s13 = scalar_lea.vmem %s893_s20, 128 }
  0x39   : > { %p895_p3 = scmp.lt.s32.totalorder %s228_s12, %s893_s20  ;;  %p896_p7 = scmp.lt.s32.totalorder %s894_s13, %s887_s7 }
  0x3a   : > { %p891_p9 = pneg %p890_p5 }
  0x3b   : > { %p897_p13 = por %p896_p7, %p895_p3 }
  0x3d   : > { %p898_p12 = pnand %p897_p13, %p891_p9 }
  0x3f   : > { %901 = shalt.err (!%p898_p12)
}
  0x40   : > { %729 = dma.hbm_to_vmem [thread:$0]  (!%p1306_p10), %s225_s5, 64, %s228_s12, %s215_s9  }
  0x41   : > { %p1326_p6 = pnand %p665_p0, %p260_p1  ;;  %s234_s17 = sand.u32 1, %s1076_s23  }
  0x42   : > { %s688_s21 = sshll.u32 %s1100_s29, 10  ;;  %s662_s24 = sshll.u32 %s234_s17, 6 }
  0x43   : > { %s244_s18 = scalar_lea.hbm %s1481_s1, %s688_s21  ;;  %s238_s4 = scalar_lea.vmem [#allocation6], %s662_s24 }
  0x44   : > { %s245_s20 = sshll.u32 %s238_s4, 4  ;;  %s235_s13 = scalar_lea.sflag [#allocation7], %s234_s17  ;;  %s246_s20 = int_to_ptr.vmem [resolvable:$true] %s245_s20 }
  0x45   : > { %p904_p13 = pneg %p1312_p11  ;;  %s915_s5 = scalar_lea.vmem %s246_s20, 1024 }
  0x46   : > { %p916_p7 = scmp.ne.s32.totalorder %s246_s20, %s915_s5  ;;  %s1111_s12 = smov [#allocation6]  }
  0x47   : > { %s920_s9 = sshll.u32 %s1111_s12, 4  ;;  %s921_s9 = int_to_ptr.vmem [resolvable:$false] %s920_s9 }
  0x48   : > { %p918_p9 = pnand %p916_p7, %p904_p13  ;;  %s922_s0 = scalar_lea.vmem %s921_s9, 2048 }
  0x49   : > { %p923_p0 = scmp.lt.s32.totalorder %s246_s20, %s921_s9  ;;  %p924_p1 = scmp.lt.s32.totalorder %s922_s0, %s915_s5 }
  0x4a   : > { %p919_p10 = pneg %p918_p9 }
  0x4b   : > { %p925_p2 = por %p924_p1, %p923_p0 }
  0x4d   : > { %p926_p4 = pnand %p925_p2, %p919_p10 }
  0x4f   : > { %929 = shalt.err (!%p926_p4)
}
  0x50   : > { %s1112_s21 = smov 64   ;;  %s1113_s24 = smov 4  }
  0x51   : > { %732 = dma.hbm_to_vmem [thread:$0]  (!%p1312_p11), %s244_s18, 1024, %s246_s20, %s235_s13, %s1112_s21, %s1112_s21, %s1113_s24  }
  0x52   : > { %264 = sbr.rel (%p1326_p6) target bundleno = 705 (0x2c1), region = 36  ;;  %s266_s17 = sand.u32 (!%p1326_p6), 1, %s1084_s25  }
  0x53   : > { %s1342_s16 = sshll.u32 (!%p1326_p6), %s266_s17, 2  ;;  %s267_s7 = scalar_lea.sflag (!%p1326_p6), [#allocation4], %s266_s17 }
  0x54   : > { %s270_s4 = scalar_lea.vmem (!%p1326_p6), [#allocation3], %s1342_s16 }
  0x57   : > { %1039 = dma.done.wait (%p1248_p8), %s267_s7, 64  }
  0x58   : > { %1041 = vsyncadd (%p1248_p8), %s267_s7, 4294967232  ;;  %s275_s0 = sand.u32 1, %s1072_s22   ;;  %p1520_p11 = scmp.ne.s32.totalorder %s1510_s10, 0 }
  0x59   : > { %s667_s26 = sshll.u32 %s275_s0, 6  ;;  %s276_s18 = scalar_lea.sflag [#allocation7], %s275_s0 }
  0x5a   : > { %s1350_s8 = scalar_lea.vmem [#allocation6], %s667_s26 }
  0x5b   : > { %1043 = dma.done.wait (%p1520_p11), %s276_s18, 1024  }
  0x5c   : > { %1045 = vsyncadd (%p1520_p11), %s276_s18, 4294966272  ;;  %s1357_s20 = sand.u32 1, %s1060_s19   ;;  %p321_p5 = scmp.lt.s32.totalorder %s1096_s28, 1 }
  0x5d   : > { %s668_s15 = sshll.u32 %s1357_s20, 3  ;;  %p671_p8 = scmp.ne.s32.totalorder %s1092_s27, 0 }
  0x5e   : > { %s322_s13 = scalar_select %p321_p5, %s1096_s28, 1 }
  0x5f   : > { %s1367_s24 = scalar_lea.vmem [#allocation8], %s668_s15  ;;  %s1369_s17 = scalar_lea.vmem [#allocation9], %s668_s15 }
  0x60   : > { %s670_s5 = sshll.u32 %s322_s13, 3  ;;  %329 = sbr.rel (%p671_p8) target bundleno = 103 (0x67), region = 48 }
  0x61   : > { %s1365_s21 = scalar_lea.vmem %s1483_s3, %s670_s5 }
  0x65   : > { %v1114_v0 = vmov 0.0  }
  0x66   : > { %330 = vst [vmem:[#allocation2] sm:$0xff] %v1114_v0 }
  0x67 PF: > { %v860_v1 = vld [vmem:[%s1350_s8 + $0x38] sm:$0xff]   ;;  %v1115_v2 = vmov 0.0   ;;  %v861_v3 = vld [vmem:[%s1350_s8 + $0x30] sm:$0xff]   ;;  %vm1116_vm0 = vmmov 0   ;;  %v862_v4 = vld [vmem:[%s1350_s8 + $0x28] sm:$0xff]   ;;  %p680_p3 = scmp.ne.s32.totalorder %s1092_s27, 3 }
  0x68   : > { %698 = vmatprep.subr.bf16.mxu0 %v1115_v2  ;;  %714 = vmatprep.mubr.msk.bf16.mxu0 %vm1116_vm0, %v1115_v2  ;;  %v863_v5 = vld [vmem:[%s1350_s8 + $0x20] sm:$0xff]   ;;  %v864_v6 = vld [vmem:[%s1350_s8 + $0x18] sm:$0xff]   ;;  %v865_v7 = vld [vmem:[%s1350_s8 + $0x10] sm:$0xff]  }
  0x69   : > { %699 = vmatpush3.bf16.msra.mxu0 %v860_v1  ;;  %v866_v8 = vld [vmem:[%s1350_s8 + $0x8] sm:$0xff]   ;;  %v867_v9 = vld [vmem:[%s1350_s8] sm:$0xff]   ;;  %v332_v10 = vld [vmem:[%s270_s4] sm:$0xf] }
  0x6a   : > { %700 = vmatprep.subr.bf16.mxu0 %v1115_v2 }
  0x6d   : > { %701 = vmatpush3.bf16.msra.mxu0 %v861_v3  ;;  %v331_v11 = vld [vmem:[#allocation2] sm:$0xff] }
  0x6e   : > { %702 = vmatprep.subr.bf16.mxu0 %v1115_v2 }
  0x71   : > { %703 = vmatpush3.bf16.msra.mxu0 %v862_v4 }
  0x72   : > { %704 = vmatprep.subr.bf16.mxu0 %v1115_v2 }
  0x75   : > { %705 = vmatpush3.bf16.msra.mxu0 %v863_v5 }
  0x76   : > { %706 = vmatprep.subr.bf16.mxu0 %v1115_v2 }
  0x79   : > { %707 = vmatpush3.bf16.msra.mxu0 %v864_v6 }
  0x7a   : > { %708 = vmatprep.subr.bf16.mxu0 %v1115_v2 }
  0x7d   : > { %709 = vmatpush3.bf16.msra.mxu0 %v865_v7 }
  0x7e   : > { %710 = vmatprep.subr.bf16.mxu0 %v1115_v2 }
  0x81   : > { %711 = vmatpush3.bf16.msra.mxu0 %v866_v8 }
  0x82   : > { %712 = vmatprep.subr.bf16.mxu0 %v1115_v2 }
  0x85   : > { %713 = vmatpush3.bf16.msra.mxu0 %v867_v9 }
  0x88   : > { %715 = vmatmul.mubr.bf16.vlgmr.msra.gmra.mxu0 %v332_v10 }
 0x148   : > { %v431_v12 = vpop.f32.mrf.mxu0 }
 0x149   : > { %v437_v13 = vadd.f32 %v431_v12, %v331_v11 }
 0x14a   : > { %v716_v14 = vpop.f32.mrf.mxu0  ;;  %442 = sbr.rel (%p680_p3) target bundleno = 657 (0x291), region = 52 }
 0x14b   : > { %438 = vst [vmem:[#allocation2] sm:$0xff] %v437_v13 }
 0x14c   : > { %v434_v15 = vpop.f32.mrf.mxu0 }
 0x14e   : > { %v717_v16 = vpop.f32.mrf.mxu0 }
 0x14f   : > { %v681_v18 = vld [vmem:[%s1482_s2] ss:$0 sm:$0xff]  ;;  %v1117_v21 = vmov 0   ;;  %v463_v27 = vlaneseq }
 0x150   : > { %v465_v20 = vld [vmem:[%s1365_s21] sm:$0xff]  ;;  %868 = vset.pattern.permute.xlu1 %v1117_v21  ;;  %869 = vset.pattern.permute.xlu0 %v1117_v21 }
 0x151   : > { %467 = vperm.xlu1 %868, %v465_v20   ;;  %v464_v29 = vand.u32 127, %v463_v27 }
 0x152   : > { %v443_v17 = vld [vmem:[#allocation2] sm:$0xff] }
 0x153   : > { %v451_v19 = vadd.f32 %v681_v18, %v443_v17 }
 0x155   : > { %452 = vmax.xlane.f32.xlu0 %v451_v19 }
 0x1cc   : > { %v468_v31 = vpop.permute.xlu1 %467 }
 0x1cd   : > { %vm469_vm1 = vcmp.eq.s32.totalorder %v464_v29, %v468_v31 }
 0x1de   : > { %v453_v22 = vpop.xlane.xlu0 %452 }
 0x1df   : > { %v454_v23 = vsub.f32 %v451_v19, %v453_v22 }
 0x1e1   : > { %v455_v24 = vmul.f32 1.442695, %v454_v23 }
 0x1e3   : > { %870 = vpow2.f32 %v455_v24 }
 0x1f0   : > { %v871_v25 = vpop.eup %870 }
 0x1f1   : > { %457 = vadd.xlane.f32.xlu0 %v871_v25 }
 0x27a   : > { %v458_v26 = vpop.xlane.xlu0 %457 }
 0x27b   : > { %872 = vlog2.f32 %v458_v26 }
 0x288   : > { %v873_v28 = vpop.eup %872 }
 0x289   : > { %v460_v30 = vmul.f32 0.6931472, %v873_v28 }
 0x28b   : > { %v461_v32 = vsub.f32 %v454_v23, %v460_v30 }
 0x28d   : > { %462 = vst [vmem:[%s1367_s24] sm:$0xff] %v461_v32  ;;  %v470_v33 = vsub.f32 0.0, %v461_v32 }
 0x28f   : > { %v471_v34 = vsel %vm469_vm1, %v470_v33, 0.0 }
 0x290   : > { %472 = vst [vmem:[%s1369_s17] sm:$0xff] %v471_v34 }
 0x291 PF: > { %s684_s27 = sshll.u32 %s1096_s28, 7  ;;  %s1521_s0 = sld [smem:[#allocation24_spill]] }
 0x292   : > { %s492_s18 = sshll.u32 %s1367_s24, 4  ;;  %s474_s8 = scalar_lea.sflag [#allocation5], %s1357_s20  ;;  %s493_s18 = int_to_ptr.vmem [resolvable:$true] %s492_s18 }
 0x293   : > { %s930_s15 = scalar_lea.vmem %s493_s18, 128  ;;  %p1522_p6 = scmp.ne.s32.totalorder %s1514_s11, 0 }
 0x294   : > { %p931_p12 = scmp.ne.s32.totalorder %s493_s18, %s930_s15  ;;  %s1118_s13 = smov [#allocation8]  }
 0x295   : > { %s934_s5 = sshll.u32 %s1118_s13, 4  ;;  %s935_s5 = int_to_ptr.vmem [resolvable:$false] %s934_s5 }
 0x296   : > { %p932_p13 = pnand %p931_p12, %p1522_p6  ;;  %s936_s12 = scalar_lea.vmem %s935_s5, 256 }
 0x297   : > { %s490_s26 = scalar_lea.hbm %s1521_s0, %s684_s27  ;;  %p937_p9 = scmp.lt.s32.totalorder %s493_s18, %s935_s5 }
 0x298   : > { %p933_p7 = pneg %p932_p13  ;;  %p938_p10 = scmp.lt.s32.totalorder %s936_s12, %s930_s15 }
 0x29a   : > { %p939_p0 = por %p938_p10, %p937_p9 }
 0x29c   : > { %p940_p1 = pnand %p939_p0, %p933_p7 }
 0x29e   : > { %943 = shalt.err (!%p940_p1)
}
 0x29f   : > { %s944_s9 = scalar_lea.hbm %s490_s26, 128  ;;  %s948_s10 = scalar_lea.hbm %s1521_s0, 256 }
 0x2a0   : > { %p945_p2 = scmp.ne.s32.totalorder %s490_s26, %s944_s9  ;;  %p949_p5 = scmp.lt.s32.totalorder %s490_s26, %s1521_s0 }
 0x2a1   : > { %p950_p8 = scmp.lt.s32.totalorder %s948_s10, %s944_s9 }
 0x2a2   : > { %p946_p4 = pnand %p945_p2, %p1522_p6 }
 0x2a3   : > { %p951_p3 = por %p950_p8, %p949_p5 }
 0x2a4   : > { %p947_p11 = pneg %p946_p4 }
 0x2a6   : > { %p952_p12 = pnand %p951_p3, %p947_p11 }
 0x2a8   : > { %955 = shalt.err (!%p952_p12)
}
 0x2a9   : > { %722 = dma.vmem_to_hbm [thread:$0]  (%p1522_p6), %s493_s18, 128, %s490_s26, %s474_s8  }
 0x2aa   : > { %s1523_s13 = sld [smem:[#allocation25_spill]]  ;;  %s505_s12 = sshll.u32 %s1369_s17, 4  ;;  %s506_s12 = int_to_ptr.vmem [resolvable:$true] %s505_s12 }
 0x2ab   : > { %s479_s21 = scalar_lea.sflag [#allocation10], %s1357_s20  ;;  %s956_s24 = scalar_lea.vmem %s506_s12, 128 }
 0x2ac   : > { %p957_p13 = scmp.ne.s32.totalorder %s506_s12, %s956_s24  ;;  %s1119_s9 = smov [#allocation9]  }
 0x2ad   : > { %s960_s10 = sshll.u32 %s1119_s9, 4  ;;  %s961_s10 = int_to_ptr.vmem [resolvable:$false] %s960_s10 }
 0x2ae   : > { %p958_p7 = pnand %p957_p13, %p1522_p6  ;;  %s962_s7 = scalar_lea.vmem %s961_s10, 256 }
 0x2af   : > { %p963_p10 = scmp.lt.s32.totalorder %s506_s12, %s961_s10  ;;  %p964_p0 = scmp.lt.s32.totalorder %s962_s7, %s956_s24 }
 0x2b0   : > { %s503_s5 = scalar_lea.hbm %s1523_s13, %s684_s27  ;;  %p959_p9 = pneg %p958_p7 }
 0x2b1   : > { %p965_p1 = por %p964_p0, %p963_p10 }
 0x2b3   : > { %p966_p2 = pnand %p965_p1, %p959_p9 }
 0x2b5   : > { %969 = shalt.err (!%p966_p2)
}
 0x2b6   : > { %s970_s28 = scalar_lea.hbm %s503_s5, 128  ;;  %s974_s27 = scalar_lea.hbm %s1523_s13, 256 }
 0x2b7   : > { %p971_p4 = scmp.ne.s32.totalorder %s503_s5, %s970_s28  ;;  %p975_p8 = scmp.lt.s32.totalorder %s503_s5, %s1523_s13 }
 0x2b8   : > { %p976_p3 = scmp.lt.s32.totalorder %s974_s27, %s970_s28 }
 0x2b9   : > { %p972_p11 = pnand %p971_p4, %p1522_p6 }
 0x2ba   : > { %p977_p12 = por %p976_p3, %p975_p8 }
 0x2bb   : > { %p973_p5 = pneg %p972_p11 }
 0x2bd   : > { %p978_p13 = pnand %p977_p12, %p973_p5 }
 0x2bf   : > { %981 = shalt.err (!%p978_p13)
}
 0x2c0   : > { %723 = dma.vmem_to_hbm [thread:$0]  (%p1522_p6), %s506_s12, 128, %s503_s5, %s479_s21  }
 0x2c1 PF: > { %s1524_s8 = sld [smem:[#allocation15_spill]]  ;;  %p741_p7 = scmp.ge.s32.totalorder %s1108_s6, 2 }
 0x2c2   : > { %p1525_p9 = scmp.ne.s32.totalorder %s1515_s14, 0 }
 0x2c4   : > { %p734_p10 = pnand %p741_p7, %p1525_p9 }
 0x2c6   : > { %p735_p0 = pneg %p734_p10 }
 0x2c7   : > { %s517_s16 = sand.u32 1, %s1524_s8  }
 0x2c8   : > { %s518_s4 = scalar_lea.sflag [#allocation5], %s517_s16 }
 0x2c9   : > { %1047 = dma.done.wait (%p735_p0), %s518_s4, 128  }
 0x2ca   : > { %1049 = vsyncadd (%p735_p0), %s518_s4, 4294967168  ;;  %s527_s15 = scalar_lea.sflag [#allocation10], %s517_s16 }
 0x2cb   : > { %1051 = dma.done.wait (%p735_p0), %s527_s15, 128  }
 0x2cc   : > { %1053 = vsyncadd (%p735_p0), %s527_s15, 4294967168  ;;  %s28_s6 = sadd.s32 1, %s1108_s6   ;;  %s1527_s5 = sld [smem:[#allocation16_spill]] }
 0x2cd   : > { %p1433_p1 = scmp.ge.s32.totalorder %s28_s6, 10   ;;  %s1528_s20 = sld [smem:[#allocation22_spill]] }
 0x2ce   : > { %s1529_s14 = sld [smem:[#allocation20_spill]]  ;;  %s1534_s18 = smov %s1060_s19 }
 0x2cf   : > { %s1530_s12 = sld [smem:[#allocation17_spill]]  ;;  %s1536_s21 = smov %s1072_s22 }
 0x2d0   : > { %s1531_s26 = sld [smem:[#allocation21_spill]]  ;;  %s1537_s22 = smov %s1076_s23 }
 0x2d1   : > { %s1532_s9 = sld [smem:[#allocation18_spill]]  ;;  %s1539_s24 = smov %s1084_s25 }
 0x2d2   : > { %s1533_s10 = sld [smem:[#allocation19_spill]]  ;;  %s1535_s19 = smov %s1527_s5 }
 0x2d3   : > { %s1541_s27 = smov %s1100_s29  ;;  %s1542_s28 = smov %s1104_s30 }
 0x2d4   : > { %s1538_s23 = smov %s1529_s14  ;;  %27 = sbr.rel (!%p1433_p1) target bundleno = 18 (0x12), region = 122 }
 0x2d5   : > { %s1540_s25 = smov %s1530_s12 }
 0x2d7   : > { %s1543_s29 = smov %s1532_s9 }
 0x2d8   : > { %s1544_s30 = smov %s1533_s10 }
 0x2d9   :  { %532 = vsyncpa [#allocation4], 1 }
 0x2da   :  { %534 = vsyncpa [#allocation4 + $0x1], 1 }
 0x2db   :  { %535 = vsyncpa [#allocation7], 1 }
 0x2dc   :  { %537 = vsyncpa [#allocation7 + $0x1], 1 }
 0x2dd   :  { %538 = vsyncpa [#allocation5], 1 }
 0x2de   :  { %540 = vsyncpa [#allocation5 + $0x1], 1 }
 0x2df   :  { %541 = vsyncpa [#allocation10], 1 }
 0x2e0   :  { %543 = vsyncpa [#allocation10 + $0x1], 1 }

</bundles_post_ra>
